<compile_context>
chip_gen: v7x
topology: tpu7x:2x2x1
jax: 0.10.0
libtpu: 0.0.40
codegen_flags: <defaults>
</compile_context>

<pallas_src>
import jax
import jax.numpy as jnp
from jax.experimental import pallas as pl
from jax.experimental.pallas import tpu as pltpu

EPS = 1e-3                      # matches nn.BatchNorm2d(n, eps=0.001)
_CB_CAP = 64                    # max channels fused per grid step (static unroll bound)
_TARGET_BLOCK_BYTES = 4 * 1024 * 1024   # aim for ~4 MiB of x per grid step


def _physical_vmem_bytes():
    """Per-core VMEM capacity; conservative 64 MiB (v7x) if the query fails."""
    try:
        info = pltpu.get_tpu_info()
        v = getattr(info, "vmem_capacity_bytes", None)
        if v:
            return int(v)
    except Exception:
        pass
    return 64 * 1024 * 1024


def _divisors(n):
    return [d for d in range(1, n + 1) if n % d == 0]


def _lane_split(hw):
    """Factor hw -> (S, lanes): lanes = largest divisor of hw that is <= 128."""
    lanes = max(d for d in range(1, min(hw, 128) + 1) if hw % d == 0)
    return hw // lanes, lanes


# ----------------------------------------------------------------------------
# Fused single-sweep path: one grid step = `cb` whole channels (all of N, H, W).
# ----------------------------------------------------------------------------
def _make_fused_kernel(cb):
    def kernel(w_ref, gamma_ref, beta_ref, x_ref, o_ref):
        #   w_ref:     SMEM (2,)              -> [w_0, w_1]
        #   gamma_ref: SMEM (C,),  beta_ref: SMEM (C,)
        #   x_ref/o_ref: VMEM (N, cb, S, lanes) -> cb channels' full data
        c0 = pl.program_id(0) * cb
        w0 = w_ref[0]
        w1 = w_ref[1]
        # Static unroll over the fused channels; each iteration is the validated
        # single-channel body (two-pass biased batch stats + folded affine).
        for j in range(cb):
            x = x_ref[:, j].astype(jnp.float32)          # (N, S, lanes)
            inv_m = 1.0 / x.size
            mean = jnp.sum(x) * inv_m
            cent = x - mean
            var = jnp.sum(cent * cent) * inv_m           # biased var (BN training fwd)
            inv_std = jax.lax.rsqrt(var + EPS)
            g = gamma_ref[c0 + j]
            b = beta_ref[c0 + j]
            scale = w0 + w1 * g * inv_std
            bias = w1 * (b - g * inv_std * mean)
            o_ref[:, j] = (scale * x + bias).astype(o_ref.dtype)
    return kernel


# ----------------------------------------------------------------------------
# M-split path (oversized channels, hit first on v7x's 64 MiB VMEM):
#   pass 1: per-(channel, chunk) local mean / centered M2
#   (pool in JAX)   pass 2: apply folded per-channel affine.
# ----------------------------------------------------------------------------
def _chunk_stats_kernel(x_ref, stats_ref):
    # x_ref: VMEM (N, 1, Sc, lanes);  stats_ref: VMEM (1, 1, 2, 128)
    x = x_ref[...].astype(jnp.float32)
    inv_m = 1.0 / x.size
    mean = jnp.sum(x) * inv_m
    cent = x - mean
    m2 = jnp.sum(cent * cent)
    vals = jnp.stack([jnp.full((128,), mean, jnp.float32),
                      jnp.full((128,), m2, jnp.float32)])     # (2, 128)
    stats_ref[...] = vals[None, None]                         # (1, 1, 2, 128)


def _apply_kernel(scale_ref, bias_ref, x_ref, o_ref):
    # scale/bias: SMEM (C,);  x_ref/o_ref: VMEM (N, 1, Sc, lanes)
    c = pl.program_id(0)
    x = x_ref[...].astype(jnp.float32)
    o_ref[...] = (scale_ref[c] * x + bias_ref[c]).astype(o_ref.dtype)


# ----------------------------------------------------------------------------
# Wrapper
# ----------------------------------------------------------------------------
def adaptive_norm(x_nchw, w0, w1, gamma, beta, *, max_block_bytes=None):
    """AdaptiveNorm training-mode forward.  x_nchw: (N, C, H, W), any float dtype.

    max_block_bytes: testing hook — extra cap on the per-block x payload
    (forces the chunked M-split path when set very small).
    """
    N, C, H, W = x_nchw.shape
    HW = H * W
    S, lanes = _lane_split(HW)                  # lane-dense (S, lanes) factoring
    x4 = x_nchw.reshape(N, C, S, lanes)         # free reshape, native NCHW order

    itemsize = x_nchw.dtype.itemsize            # dtype-aware budgeting (bf16 etc.)

    w0f = jnp.asarray(w0, jnp.float32).reshape(())
    w1f = jnp.asarray(w1, jnp.float32).reshape(())
    w = jnp.stack([w0f, w1f])
    gamma1 = jnp.asarray(gamma, jnp.float32).reshape(C)
    beta1 = jnp.asarray(beta, jnp.float32).reshape(C)

    phys_vmem = _physical_vmem_bytes()
    budget = max(16 * 1024 * 1024, (phys_vmem * 3) // 4)   # ~48 MiB v7x, ~96 MiB v5e/v6e

    per_ch_io = N * S * lanes * itemsize        # one channel of x (== one of o)
    per_ch_f32 = N * S * lanes * 4              # in-kernel f32 temporaries

    def fused_vmem_need(d):
        # in+out double-buffered at I/O width, plus f32 temps, plus slack.
        return 4 * d * per_ch_io + 3 * d * per_ch_f32 + (1 << 20)

    # ---- choose channels-per-block for the fused single-sweep path ---------
    divs = [d for d in _divisors(C) if d <= _CB_CAP]
    feasible = [d for d in divs
                if fused_vmem_need(d) <= budget
                and (max_block_bytes is None or d * per_ch_io <= max_block_bytes)]

    if feasible:
        desired = max(1, _TARGET_BLOCK_BYTES // max(1, per_ch_io))
        under = [d for d in feasible if d <= desired] or [min(feasible)]
        # Prefer an even grid extent so v7x's 2 TensorCores shard evenly.
        even = [d for d in under if (C // d) % 2 == 0]
        cb = max(even) if even else max(under)

        block = (N, cb, S, lanes)
        vmem_limit = int(min(budget, max(32 * 1024 * 1024, 2 * fused_vmem_need(cb))))
        out = pl.pallas_call(
            _make_fused_kernel(cb),
            out_shape=jax.ShapeDtypeStruct((N, C, S, lanes), x_nchw.dtype),
            grid=(C // cb,),
            in_specs=[
                pl.BlockSpec(memory_space=pltpu.SMEM),     # [w0, w1]
                pl.BlockSpec(memory_space=pltpu.SMEM),     # gamma (C,)
                pl.BlockSpec(memory_space=pltpu.SMEM),     # beta  (C,)
                pl.BlockSpec(block, lambda c: (0, c, 0, 0)),
            ],
            out_specs=pl.BlockSpec(block, lambda c: (0, c, 0, 0)),
            compiler_params=pltpu.CompilerParams(
                dimension_semantics=("parallel",),
                vmem_limit_bytes=vmem_limit),
        )(w, gamma1, beta1, x4)
        return out.reshape(N, C, H, W)

    # ---- M-split path: a single channel block does not fit the VMEM budget ---
    # Chunk the sublane (S) axis; chunk size must be a multiple of 8 or S itself
    # so the block's second-to-last dim stays legal.
    sc_candidates = sorted({d for d in _divisors(S) if d % 8 == 0} | {S})

    def chunk_ok(sc):
        need = 4 * N * sc * lanes * itemsize + 3 * N * sc * lanes * 4 + (1 << 20)
        if need > budget:
            return False
        if max_block_bytes is not None and N * sc * lanes * itemsize > max_block_bytes:
            return False
        return True

    ok = [sc for sc in sc_candidates if chunk_ok(sc)]
    # TODO(synk): if S has no small multiple-of-8 divisor, we fall back to the
    #             smallest legal chunk and let the compiler stretch VMEM.
    sc = max(ok) if ok else min(sc_candidates)
    n_chunks = S // sc
    chunk_elems = N * sc * lanes

    chunk_need = 4 * N * sc * lanes * itemsize + 3 * N * sc * lanes * 4 + (1 << 20)
    vmem_limit = int(min(budget, max(32 * 1024 * 1024, 2 * chunk_need)))
    x_block = (N, 1, sc, lanes)

    # Pass 1: per-(channel, chunk) local stats (one read of x).
    stats = pl.pallas_call(
        _chunk_stats_kernel,
        out_shape=jax.ShapeDtypeStruct((C, n_chunks, 2, 128), jnp.float32),
        grid=(C, n_chunks),
        in_specs=[pl.BlockSpec(x_block, lambda c, s: (0, c, s, 0))],
        out_specs=pl.BlockSpec((1, 1, 2, 128), lambda c, s: (c, s, 0, 0)),
        compiler_params=pltpu.CompilerParams(
            dimension_semantics=("parallel", "parallel"),
            vmem_limit_bytes=vmem_limit),
    )(x4)

    # Pool chunk stats (equal chunk counts -> simple parallel-variance combine).
    chunk_means = stats[:, :, 0, 0]          # (C, n_chunks)
    chunk_m2 = stats[:, :, 1, 0]             # (C, n_chunks)
    mean_c = jnp.mean(chunk_means, axis=1)                               # (C,)
    total = jnp.float32(chunk_elems * n_chunks)
    var_c = (jnp.sum(chunk_m2, axis=1)
             + chunk_elems * jnp.sum((chunk_means - mean_c[:, None]) ** 2, axis=1)
             ) / total                                                   # biased var

    inv_std = jax.lax.rsqrt(var_c + EPS)
    scale_c = (w0f + w1f * gamma1 * inv_std).astype(jnp.float32)
    bias_c = (w1f * (beta1 - gamma1 * inv_std * mean_c)).astype(jnp.float32)

    # Pass 2: folded per-channel affine (second read + the only write of x).
    out = pl.pallas_call(
        _apply_kernel,
        out_shape=jax.ShapeDtypeStruct((N, C, S, lanes), x_nchw.dtype),
        grid=(C, n_chunks),
        in_specs=[
            pl.BlockSpec(memory_space=pltpu.SMEM),     # scale (C,)
            pl.BlockSpec(memory_space=pltpu.SMEM),     # bias  (C,)
            pl.BlockSpec(x_block, lambda c, s: (0, c, s, 0)),
        ],
        out_specs=pl.BlockSpec(x_block, lambda c, s: (0, c, s, 0)),
        compiler_params=pltpu.CompilerParams(
            dimension_semantics=("parallel", "parallel"),
            vmem_limit_bytes=vmem_limit),
    )(scale_c, bias_c, x4)
    return out.reshape(N, C, H, W)


def _reference(x_nchw, w0, w1, gamma, beta):
    """Pure-JAX reference of AdaptiveNorm forward (training-mode BN, f32 math)."""
    xf = x_nchw.astype(jnp.float32)
    mean = jnp.mean(xf, axis=(0, 2, 3), keepdims=True)
    var = jnp.mean((xf - mean) ** 2, axis=(0, 2, 3), keepdims=True)
    bn = gamma.reshape(1, -1, 1, 1) * (xf - mean) * jax.lax.rsqrt(var + EPS) \
        + beta.reshape(1, -1, 1, 1)
    return w0 * xf + w1 * bn


if __name__ == "__main__":
    k0, k1 = jax.random.split(jax.random.PRNGKey(0))
    N, C, H, W = 2, 4, 16, 16
    x = jax.random.normal(k0, (N, C, H, W), dtype=jnp.float32)

    # Deterministic parameters (module defaults are w_0=1, w_1=0, gamma=1, beta=0;
    # nontrivial values used so the BN path is exercised).
    w0 = jnp.float32(0.7)
    w1 = jnp.float32(0.3)
    gamma = jnp.linspace(0.5, 1.5, C, dtype=jnp.float32)
    beta = jnp.linspace(-0.1, 0.1, C, dtype=jnp.float32)

    # 1) Fused single-sweep path, f32 I/O.
    out = jax.block_until_ready(adaptive_norm(x, w0, w1, gamma, beta))
    ref = _reference(x, w0, w1, gamma, beta)
    assert out.shape == (N, C, H, W)
    assert jnp.allclose(out, ref, atol=1e-4, rtol=1e-4)

    # 2) Fused path with bf16 I/O (stats/affine still f32 in-kernel).
    x_bf = x.astype(jnp.bfloat16)
    out_bf = jax.block_until_ready(adaptive_norm(x_bf, w0, w1, gamma, beta))
    ref_bf = _reference(x_bf, w0, w1, gamma, beta)
    assert out_bf.dtype == jnp.bfloat16
    assert jnp.allclose(out_bf.astype(jnp.float32), ref_bf, atol=5e-2, rtol=5e-2)

    # 3) Chunked M-split path (forced via a tiny per-block cap to emulate a
    #    channel that would not fit the v7x VMEM budget).
    x2 = jax.random.normal(k1, (N, C, 64, 64), dtype=jnp.float32)
    out2 = jax.block_until_ready(
        adaptive_norm(x2, w0, w1, gamma, beta, max_block_bytes=8 * 1024))
    ref2 = _reference(x2, w0, w1, gamma, beta)
    assert jnp.allclose(out2, ref2, atol=1e-4, rtol=1e-4)

    print("KERNEL_OK")
</pallas_src>

<mosaic_0001>
module attributes {stable_mosaic.version = 11 : i64} {
  func.func @kernel(%arg0: i32, %arg1: memref<2xf32, #tpu.memory_space<smem>>, %arg2: memref<4xf32, #tpu.memory_space<smem>>, %arg3: memref<4xf32, #tpu.memory_space<smem>>, %arg4: memref<2x2x2x128xf32, #tpu.memory_space<vmem>>, %arg5: memref<2x2x2x128xf32, #tpu.memory_space<vmem>>) attributes {dimension_semantics = [#tpu.dimension_semantics<parallel>], iteration_bounds = array<i64: 2>, scalar_prefetch = 0 : i64, scratch_operands = 0 : i64, tpu.core_type = #tpu.core_type<tc>, window_params = [{transform_indices = @transform_0, window_bounds = array<i64: 2>}, {transform_indices = @transform_1, window_bounds = array<i64: 4>}, {transform_indices = @transform_2, window_bounds = array<i64: 4>}, {transform_indices = @transform_3, window_bounds = array<i64: 2, 2, 2, 128>}, {transform_indices = @transform_4, window_bounds = array<i64: 2, 2, 2, 128>}]} {
    %c2_i32 = arith.constant 2 : i32
    %0 = arith.muli %arg0, %c2_i32 : i32
    %c0 = arith.constant 0 : index
    %1 = memref.load %arg1[%c0] : memref<2xf32, #tpu.memory_space<smem>>
    %c1 = arith.constant 1 : index
    %2 = memref.load %arg1[%c1] : memref<2xf32, #tpu.memory_space<smem>>
    %c0_0 = arith.constant 0 : index
    %c0_1 = arith.constant 0 : index
    %c0_2 = arith.constant 0 : index
    %c0_3 = arith.constant 0 : index
    %3 = vector.load %arg4[%c0_0, %c0_1, %c0_2, %c0_3] : memref<2x2x2x128xf32, #tpu.memory_space<vmem>>, vector<2x1x2x128xf32>
    %4 = vector.shape_cast %3 : vector<2x1x2x128xf32> to vector<2x2x128xf32>
    %5 = vector.shape_cast %4 : vector<2x2x128xf32> to vector<1x2x2x128xf32>
    %cst = arith.constant dense<0.000000e+00> : vector<1xf32>
    %6 = vector.multi_reduction <add>, %5, %cst [1, 2, 3] : vector<1x2x2x128xf32> to vector<1xf32>
    %7 = vector.shape_cast %6 : vector<1xf32> to vector<1x1x1x1xf32>
    %8 = vector.extract %7[0, 0, 0, 0] : f32 from vector<1x1x1x1xf32>
    %cst_4 = arith.constant 0.001953125 : f32
    %9 = arith.mulf %8, %cst_4 : f32
    %10 = vector.broadcast %9 : f32 to vector<2x2x128xf32>
    %11 = arith.subf %4, %10 : vector<2x2x128xf32>
    %12 = arith.mulf %11, %11 : vector<2x2x128xf32>
    %13 = vector.shape_cast %12 : vector<2x2x128xf32> to vector<1x2x2x128xf32>
    %cst_5 = arith.constant dense<0.000000e+00> : vector<1xf32>
    %14 = vector.multi_reduction <add>, %13, %cst_5 [1, 2, 3] : vector<1x2x2x128xf32> to vector<1xf32>
    %15 = vector.shape_cast %14 : vector<1xf32> to vector<1x1x1x1xf32>
    %16 = vector.extract %15[0, 0, 0, 0] : f32 from vector<1x1x1x1xf32>
    %cst_6 = arith.constant 0.001953125 : f32
    %17 = arith.mulf %16, %cst_6 : f32
    %cst_7 = arith.constant 1.000000e-03 : f32
    %18 = arith.addf %17, %cst_7 : f32
    %19 = math.rsqrt %18 : f32
    %c0_i32 = arith.constant 0 : i32
    %20 = arith.addi %0, %c0_i32 : i32
    %21 = arith.index_cast %20 : i32 to index
    %22 = memref.load %arg2[%21] : memref<4xf32, #tpu.memory_space<smem>>
    %c0_i32_8 = arith.constant 0 : i32
    %23 = arith.addi %0, %c0_i32_8 : i32
    %24 = arith.index_cast %23 : i32 to index
    %25 = memref.load %arg3[%24] : memref<4xf32, #tpu.memory_space<smem>>
    %26 = arith.mulf %2, %22 : f32
    %27 = arith.mulf %26, %19 : f32
    %28 = arith.addf %1, %27 : f32
    %29 = arith.mulf %22, %19 : f32
    %30 = arith.mulf %29, %9 : f32
    %31 = arith.subf %25, %30 : f32
    %32 = arith.mulf %2, %31 : f32
    %33 = vector.broadcast %28 : f32 to vector<2x2x128xf32>
    %34 = arith.mulf %33, %4 : vector<2x2x128xf32>
    %35 = vector.broadcast %32 : f32 to vector<2x2x128xf32>
    %36 = arith.addf %34, %35 : vector<2x2x128xf32>
    %c0_9 = arith.constant 0 : index
    %c0_10 = arith.constant 0 : index
    %c0_11 = arith.constant 0 : index
    %c0_12 = arith.constant 0 : index
    %37 = vector.load %arg5[%c0_9, %c0_10, %c0_11, %c0_12] : memref<2x2x2x128xf32, #tpu.memory_space<vmem>>, vector<2x1x2x128xf32>
    %38 = vector.shape_cast %37 : vector<2x1x2x128xf32> to vector<2x2x128xf32>
    %39 = vector.shape_cast %36 : vector<2x2x128xf32> to vector<2x1x2x128xf32>
    tpu.vector_store %arg5[%c0_9, %c0_10, %c0_11, %c0_12], %39 {strides = array<i32>} : memref<2x2x2x128xf32, #tpu.memory_space<vmem>>, vector<2x1x2x128xf32>,
    %c0_13 = arith.constant 0 : index
    %c1_14 = arith.constant 1 : index
    %c0_15 = arith.constant 0 : index
    %c0_16 = arith.constant 0 : index
    %40 = vector.load %arg4[%c0_13, %c1_14, %c0_15, %c0_16] : memref<2x2x2x128xf32, #tpu.memory_space<vmem>>, vector<2x1x2x128xf32>
    %41 = vector.shape_cast %40 : vector<2x1x2x128xf32> to vector<2x2x128xf32>
    %42 = vector.shape_cast %41 : vector<2x2x128xf32> to vector<1x2x2x128xf32>
    %cst_17 = arith.constant dense<0.000000e+00> : vector<1xf32>
    %43 = vector.multi_reduction <add>, %42, %cst_17 [1, 2, 3] : vector<1x2x2x128xf32> to vector<1xf32>
    %44 = vector.shape_cast %43 : vector<1xf32> to vector<1x1x1x1xf32>
    %45 = vector.extract %44[0, 0, 0, 0] : f32 from vector<1x1x1x1xf32>
    %cst_18 = arith.constant 0.001953125 : f32
    %46 = arith.mulf %45, %cst_18 : f32
    %47 = vector.broadcast %46 : f32 to vector<2x2x128xf32>
    %48 = arith.subf %41, %47 : vector<2x2x128xf32>
    %49 = arith.mulf %48, %48 : vector<2x2x128xf32>
    %50 = vector.shape_cast %49 : vector<2x2x128xf32> to vector<1x2x2x128xf32>
    %cst_19 = arith.constant dense<0.000000e+00> : vector<1xf32>
    %51 = vector.multi_reduction <add>, %50, %cst_19 [1, 2, 3] : vector<1x2x2x128xf32> to vector<1xf32>
    %52 = vector.shape_cast %51 : vector<1xf32> to vector<1x1x1x1xf32>
    %53 = vector.extract %52[0, 0, 0, 0] : f32 from vector<1x1x1x1xf32>
    %cst_20 = arith.constant 0.001953125 : f32
    %54 = arith.mulf %53, %cst_20 : f32
    %cst_21 = arith.constant 1.000000e-03 : f32
    %55 = arith.addf %54, %cst_21 : f32
    %56 = math.rsqrt %55 : f32
    %c1_i32 = arith.constant 1 : i32
    %57 = arith.addi %0, %c1_i32 : i32
    %58 = arith.index_cast %57 : i32 to index
    %59 = memref.load %arg2[%58] : memref<4xf32, #tpu.memory_space<smem>>
    %c1_i32_22 = arith.constant 1 : i32
    %60 = arith.addi %0, %c1_i32_22 : i32
    %61 = arith.index_cast %60 : i32 to index
    %62 = memref.load %arg3[%61] : memref<4xf32, #tpu.memory_space<smem>>
    %63 = arith.mulf %2, %59 : f32
    %64 = arith.mulf %63, %56 : f32
    %65 = arith.addf %1, %64 : f32
    %66 = arith.mulf %59, %56 : f32
    %67 = arith.mulf %66, %46 : f32
    %68 = arith.subf %62, %67 : f32
    %69 = arith.mulf %2, %68 : f32
    %70 = vector.broadcast %65 : f32 to vector<2x2x128xf32>
    %71 = arith.mulf %70, %41 : vector<2x2x128xf32>
    %72 = vector.broadcast %69 : f32 to vector<2x2x128xf32>
    %73 = arith.addf %71, %72 : vector<2x2x128xf32>
    %c0_23 = arith.constant 0 : index
    %c1_24 = arith.constant 1 : index
    %c0_25 = arith.constant 0 : index
    %c0_26 = arith.constant 0 : index
    %74 = vector.load %arg5[%c0_23, %c1_24, %c0_25, %c0_26] : memref<2x2x2x128xf32, #tpu.memory_space<vmem>>, vector<2x1x2x128xf32>
    %75 = vector.shape_cast %74 : vector<2x1x2x128xf32> to vector<2x2x128xf32>
    %76 = vector.shape_cast %73 : vector<2x2x128xf32> to vector<2x1x2x128xf32>
    tpu.vector_store %arg5[%c0_23, %c1_24, %c0_25, %c0_26], %76 {strides = array<i32>} : memref<2x2x2x128xf32, #tpu.memory_space<vmem>>, vector<2x1x2x128xf32>,
    return
  }
  func.func @transform_0(%arg0: i32) -> i32 {
    %c0_i32 = arith.constant 0 : i32
    %c0_i32_0 = arith.constant 0 : i32
    return %c0_i32 : i32
  }
  func.func @transform_1(%arg0: i32) -> i32 {
    %c0_i32 = arith.constant 0 : i32
    %c0_i32_0 = arith.constant 0 : i32
    return %c0_i32 : i32
  }
  func.func @transform_2(%arg0: i32) -> i32 {
    %c0_i32 = arith.constant 0 : i32
    %c0_i32_0 = arith.constant 0 : i32
    return %c0_i32 : i32
  }
  func.func @transform_3(%arg0: i32) -> (i32, i32, i32, i32) {
    %c0_i32 = arith.constant 0 : i32
    %c0_i32_0 = arith.constant 0 : i32
    %c0_i32_1 = arith.constant 0 : i32
    %c0_i32_2 = arith.constant 0 : i32
    return %c0_i32, %arg0, %c0_i32_0, %c0_i32_1 : i32, i32, i32, i32
  }
  func.func @transform_4(%arg0: i32) -> (i32, i32, i32, i32) {
    %c0_i32 = arith.constant 0 : i32
    %c0_i32_0 = arith.constant 0 : i32
    %c0_i32_1 = arith.constant 0 : i32
    %c0_i32_2 = arith.constant 0 : i32
    return %c0_i32, %arg0, %c0_i32_0, %c0_i32_1 : i32, i32, i32, i32
  }
}

</mosaic_0001>

<bundles_post_ra>
// kernel: tpu_custom_call.1
= control target key start
LH: loop header
LB: loop body
LE: loop exit
PB: predicated region body
PF: predicated region fallthrough
CT: control target
= control target key end

     0   :  { %s1089_s0 = inlined_call_operand.hbm [shape: f32[2], index: 0, kind: input, shape index: {}]   ;;  %s1090_s1 = inlined_call_operand.vmem [shape: f32[4], index: 1, kind: input, shape index: {}]   ;;  %s1091_s2 = inlined_call_operand.vmem [shape: f32[4], index: 2, kind: input, shape index: {}]   ;;  %s1092_s3 = inlined_call_operand.hbm [shape: f32[2,4,2,128], index: 3, kind: input, shape index: {}]   ;;  %s1093_s4 = inlined_call_operand.hbm [shape: f32[2,4,2,128], index: 4, kind: output, shape index: {}]  }
   0x1   :  { %1098 = sst [smem:[#allocation22_spill]] %s1089_s0 }
   0x2   :  { %1099 = sst [smem:[#allocation23_spill]] %s1090_s1 }
   0x3   :  { %9 = vsyncpa [#allocation5], 0 }
   0x4   :  { %10 = vsyncpa [#allocation6], 0 }
   0x5   :  { %11 = vsyncpa [#allocation9], 0 }
   0x6   :  { %12 = vsyncpa [#allocation3], 0 }
   0x7   :  { %14 = vsyncpa [#allocation3 + $0x1], 0 }
   0x8   :  { %15 = vsyncpa [#allocation4], 0 }
   0x9   :  { %17 = vsyncpa [#allocation4 + $0x1], 0  ;;  %s822_s15 = smov 0   ;;  %s824_s16 = smov 0  }
   0xa   :  { %s826_s17 = smov 0   ;;  %s828_s18 = smov 0  }
   0xb LB: > { %s843_s19 = sadd.s32 4294967295, %s781_s18   ;;  %s546_s20 = sadd.s32 4294967294, %s781_s18   ;;  %s781_s18 = sphi %s828_s18, %s1121_s18   ;;  %s777_s17 = sphi %s826_s17, %s1120_s17   ;;  %s773_s16 = sphi %s824_s16, %s1119_s16   ;;  %s769_s15 = sphi %s822_s15, %s1118_s15  }
   0xc   : > { %s847_s21 = sadd.s32 1, %s781_s18   ;;  %s93_s22 = sadd.s32 1, %s777_s17 }
   0xd   : > { %s90_s23 = ssub.s32 %s781_s18, %s847_s21  ;;  %p100_p0 = scmp.ne.s32.totalorder %s777_s17, %s773_s16 }
   0xe   : > { %p91_p1 = scmp.eq.s32.totalorder %s90_s23, 0  ;;  %p101_p2 = scmp.eq.s32.totalorder %s781_s18, 0 }
   0xf   : > { %p106_p3 = scmp.ne.s32.totalorder %s773_s16, %s769_s15  ;;  %p1094_p4 = scmp.eq.s32.totalorder %s843_s19, 0 }
  0x10   : > { %s859_s24 = scalar_select %p91_p1, %s777_s17, %s93_s22  }
  0x11   : > { %p861_p5 = por %p101_p2, %p100_p0  ;;  %p867_p6 = por %p1094_p4, %p106_p3 }
  0x12   : > { %p130_p7 = scmp.eq.s32.totalorder %s843_s19, 1  ;;  %p136_p8 = scmp.eq.s32.totalorder %s546_s20, 1 }
  0x13   : > { %s1101_s26 = scalar_select %p867_p6, 1, 0 }
  0x14   : > { %p547_p9 = scmp.ge.s32.totalorder %s781_s18, 1  ;;  %p143_p10 = scmp.lt.s32.totalorder %s781_s18, 3 }
  0x15   : > { %p874_p11 = por %p130_p7, %p100_p0  ;;  %p878_p12 = por %p136_p8, %p106_p3 }
  0x16   : > { %p882_p13 = pnand %p547_p9, %p143_p10  ;;  %s1105_s1 = sld [smem:[#allocation23_spill]] }
  0x17   : > { %s1102_s27 = scalar_select %p874_p11, 1, 0 }
  0x18   : > { %s1103_s28 = scalar_select %p878_p12, 1, 0 }
  0x19   : > { %p617_p1 = pneg %p882_p13  ;;  %s176_s9 = sshll.u32 %s1091_s2, 4  ;;  %s900_s9 = int_to_ptr.vmem [resolvable:$true] %s176_s9 }
  0x1a   : > { %s1107_s0 = sld [smem:[#allocation22_spill]] }
  0x1b   : > { %p896_p0 = pnand %p617_p1, %p1094_p4 }
  0x1c   : > { %s165_s6 = sshll.u32 %s1105_s1, 4  ;;  %s166_s6 = int_to_ptr.vmem [resolvable:$true] %s165_s6 }
  0x1d   : > { %p690_p3 = pneg %p896_p0 }
  0x20   : > { %s688_s13 = scalar_lea.hbm %s1107_s0, 16 }
  0x21   : > { %p689_p2 = scmp.ne.s32.totalorder %s1107_s0, %s688_s13  ;;  %p695_p9 = scmp.lt.u32.totalorder %s688_s13, %s1107_s0 }
  0x23   : > { %p691_p7 = pnand %p690_p3, %p689_p2 }
  0x25   : > { %p692_p8 = pneg %p691_p7 }
  0x27   : > { %p697_p10 = pnand %p695_p9, %p692_p8 }
  0x29   : > { %700 = shalt.err (!%p697_p10)
}
  0x2a   : > { %s783_s30 = smov [#allocation2]   ;;  %s701_s8 = scalar_lea.vmem %s166_s6, 16 }
  0x2b   : > { %620 = dma.hbm_to_smem (!%p896_p0), %s1107_s0, 16, %s783_s30, [#allocation5]  }
  0x2c   : > { %p702_p1 = scmp.ne.s32.totalorder %s166_s6, %s701_s8  ;;  %p709_p4 = scmp.lt.s32.totalorder %s166_s6, %s166_s6 }
  0x2d   : > { %p710_p12 = scmp.lt.s32.totalorder %s701_s8, %s701_s8 }
  0x2e   : > { %p704_p2 = pnand %p702_p1, %p690_p3 }
  0x2f   : > { %p711_p11 = por %p710_p12, %p709_p4 }
  0x30   : > { %p705_p7 = pneg %p704_p2 }
  0x32   : > { %p712_p6 = pnand %p711_p11, %p705_p7 }
  0x34   : > { %715 = shalt.err (!%p712_p6)
}
  0x35   : > { %s784_s11 = smov [#allocation7]   ;;  %s716_s12 = scalar_lea.vmem %s900_s9, 16 }
  0x36   : > { %623 = dma.vmem_to_smem (!%p896_p0), %s166_s6, 16, %s784_s11, [#allocation6]  }
  0x37   : > { %p717_p8 = scmp.ne.s32.totalorder %s900_s9, %s716_s12  ;;  %p724_p1 = scmp.lt.s32.totalorder %s900_s9, %s900_s9 }
  0x38   : > { %p725_p2 = scmp.lt.s32.totalorder %s716_s12, %s716_s12 }
  0x39   : > { %p719_p9 = pnand %p717_p8, %p690_p3 }
  0x3a   : > { %p726_p4 = por %p725_p2, %p724_p1 }
  0x3b   : > { %p720_p10 = pneg %p719_p9 }
  0x3d   : > { %p727_p11 = pnand %p726_p4, %p720_p10 }
  0x3f   : > { %730 = shalt.err (!%p727_p11)
}
  0x40   : > { %s785_s13 = smov [#allocation8]   ;;  %p551_p6 = scmp.ge.s32.totalorder %s781_s18, 2 }
  0x41   : > { %626 = dma.vmem_to_smem (!%p896_p0), %s900_s9, 16, %s785_s13, [#allocation9]  }
  0x42   : > { %183 = sbr.rel (%p551_p6) target bundleno = 86 (0x56), region = 28 }
  0x49   : > { %s187_s6 = sand.u32 1, %s777_s17   ;;  %s574_s20 = sshll.u32 %s781_s18, 6 }
  0x4a   : > { %s552_s14 = sshll.u32 %s187_s6, 3  ;;  %s197_s23 = scalar_lea.hbm %s1092_s3, %s574_s20 }
  0x4b   : > { %s594_s10 = scalar_select %p861_p5, [#allocation0], [#allocation16] }
  0x4c   : > { %s191_s5 = scalar_lea.vmem [#allocation10], %s552_s14  ;;  %s786_s8 = smov 128  }
  0x4d   : > { %s202_s30 = sld [smem:[%s594_s10]]   ;;  %s210_s7 = sshll.u32 %s191_s5, 4  ;;  %s211_s7 = int_to_ptr.vmem [resolvable:$true] %s210_s7 }
  0x4e   : > { %595 = sst [smem:[#allocation13]] (%p861_p5), %s786_s8  ;;  %s787_s11 = smov 64  }
  0x4f   : > { %596 = sst [smem:[#allocation13 + $0x1]] (%p861_p5), %s787_s11  ;;  %s788_s12 = smov 2  }
  0x50   : > { %597 = sst [smem:[#allocation13 + $0x2]] (%p861_p5), %s788_s12  ;;  %s789_s13 = smov 32  }
  0x51   : > { %598 = sst [smem:[#allocation13 + $0x3]] (%p861_p5), %s789_s13  ;;  %s188_s10 = scalar_lea.sflag [#allocation3], %s187_s6 }
  0x52   : > { %599 = sst [smem:[#allocation13 + $0x4]] (%p861_p5), %s789_s13  ;;  %s790_s22 = smov [#allocation12]  }
  0x53   : > { %s555_s20 = sshll.u32 %s202_s30, 26  ;;  %600 = sst [smem:[#allocation13 + $0x5]] (%p861_p5), %s788_s12 }
  0x54   : > { %s556_s14 = sadd.s32 134217728, %s555_s20 }
  0x55   : > { %601 = dma.general (%p861_p5), %s197_s23, 128, %s211_s7, %s188_s10, %s790_s22, [#allocation13], %s556_s14, 0  }
  0x56 PF: > { %235 = sbr.rel (%p882_p13) target bundleno = 901 (0x385), region = 36  ;;  %p1108_p12 = scmp.eq.s32.totalorder (!%p882_p13), %s843_s19, 0 }
  0x5d   : > { %748 = dma.done.wait (%p1108_p12), [#allocation5], 16   ;;  %p1109_p0 = pmov %p1108_p12 }
  0x5f   : > { %750 = vsyncadd (%p1109_p0), [#allocation5], 4294967280  ;;  %p1110_p3 = pmov %p1109_p0 }
  0x60   : > { %p1111_p7 = pmov %p1109_p0 }
  0x61   : > { %752 = dma.done.wait (%p1110_p3), [#allocation6], 16  }
  0x62   : > { %754 = vsyncadd (%p1111_p7), [#allocation6], 4294967280  ;;  %p1112_p8 = pmov %p1109_p0 }
  0x63   : > { %p1113_p5 = pmov %p1109_p0 }
  0x64   : > { %756 = dma.done.wait (%p1112_p8), [#allocation9], 16  }
  0x65   : > { %758 = vsyncadd (%p1113_p5), [#allocation9], 4294967280  ;;  %s975_s25 = sand.u32 1, %s773_s16   ;;  %p1114_p13 = scmp.ne.s32.totalorder %s1101_s26, 0 }
  0x66   : > { %s1097_s29 = sshll.u32 %s975_s25, 3  ;;  %s250_s6 = scalar_lea.sflag [#allocation3], %s975_s25 }
  0x67   : > { %s253_s9 = scalar_lea.vmem [#allocation10], %s1097_s29 }
  0x68   : > { %760 = dma.done.wait (%p1114_p13), %s250_s6, 128  }
  0x69   : > { %762 = vsyncadd (%p1114_p13), %s250_s6, 4294967168 }
  0x6a   : > { %258 = sfence }
  0x6b   : > { %v985_v0 = vld [vmem:[%s253_s9] sm:$0x3]  ;;  %v987_v1 = vld [vmem:[%s253_s9 + $0x4] sm:$0x3]  ;;  %vm286_vm0 = vcmask 1041408   ;;  %s1011_s8 = sshll.u32 %s843_s19, 1 }
  0x6c   : > { %v287_v2 = vsel %vm286_vm0, %v985_v0, 0.0  ;;  %v288_v3 = vsel %vm286_vm0, %v987_v1, 0.0  ;;  %v993_v5 = vld [vmem:[%s253_s9 + $0x2] sm:$0x3]  ;;  %v995_v6 = vld [vmem:[%s253_s9 + $0x6] sm:$0x3] }
  0x6d   : > { %v289_v4 = vadd.f32 %v288_v3, %v287_v2  ;;  %v342_v7 = vsel %vm286_vm0, %v993_v5, 0.0  ;;  %v343_v8 = vsel %vm286_vm0, %v995_v6, 0.0  ;;  %s1013_s11 = sld [smem:[#allocation2 + $0x1]]  ;;  %s1016_s13 = sld [smem:[#allocation2]] }
  0x6e   : > { %v344_v9 = vadd.f32 %v343_v8, %v342_v7  ;;  %s322_s12 = sld [smem:[#allocation7 + %s1011_s8]] }
  0x6f   : > { %290 = vadd.xlane.f32.xlu0 %v289_v4  ;;  %s323_s14 = sld [smem:[#allocation8 + %s1011_s8]] }
  0x70   : > { %345 = vadd.xlane.f32.xlu1 %v344_v9 }
  0x74   : > { %s324_s20 = smul.f32 %s1013_s11, %s322_s12 }
  0xfc   : > { %v291_v10 = vpop.xlane.xlu0 %290 }
  0xfd   : > { %v292_v11 = vrot.slane %v291_v10, 4  ;;  %v346_v32 = vpop.xlane.xlu1 %345 }
  0xfe   : > { %v347_v33 = vrot.slane %v346_v32, 4 }
  0xff   : > { %v293_v12 = vadd.f32 %v292_v11, %v291_v10 }
 0x100   : > { %v348_v34 = vadd.f32 %v347_v33, %v346_v32 }
 0x101   : > { %v294_v13 = vrot.slane %v293_v12, 2 }
 0x102   : > { %v349_v35 = vrot.slane %v348_v34, 2 }
 0x103   : > { %v295_v14 = vadd.f32 %v294_v13, %v293_v12 }
 0x104   : > { %v350_v37 = vadd.f32 %v349_v35, %v348_v34 }
 0x105   : > { %v296_v15 = vrot.slane %v295_v14, 1 }
 0x106   : > { %v351_v38 = vrot.slane %v350_v37, 1 }
 0x107   : > { %v297_v16 = vadd.f32 %v296_v15, %v295_v14 }
 0x108   : > { %v352_v40 = vadd.f32 %v351_v38, %v350_v37 }
 0x109   : > { %576 = vpush %v297_v16 }
 0x13a   : > { %s1001_s26 = spop %576 }
 0x13b   : > { %s299_s23 = smul.f32 0.001953125, %s1001_s26  ;;  %s1115_s26 = sshll.u32 %s975_s25, 3 }
 0x13d   : > { %v300_v17 = vstv %s299_s23 }
 0x13e   : > { %v301_v18 = vsub.f32 %v985_v0, %v300_v17  ;;  %v302_v19 = vsub.f32 %v987_v1, %v300_v17 }
 0x140   : > { %v303_v20 = vmul.f32 %v301_v18, %v301_v18  ;;  %v304_v21 = vmul.f32 %v302_v19, %v302_v19 }
 0x142   : > { %v305_v22 = vsel %vm286_vm0, %v303_v20, 0.0  ;;  %v306_v23 = vsel %vm286_vm0, %v304_v21, 0.0 }
 0x143   : > { %v307_v24 = vadd.f32 %v306_v23, %v305_v22 }
 0x145   : > { %308 = vadd.xlane.f32.xlu0 %v307_v24 }
 0x1d2   : > { %v309_v25 = vpop.xlane.xlu0 %308 }
 0x1d3   : > { %v310_v26 = vrot.slane %v309_v25, 4 }
 0x1d5   : > { %v311_v27 = vadd.f32 %v310_v26, %v309_v25 }
 0x1d7   : > { %v312_v28 = vrot.slane %v311_v27, 2 }
 0x1d9   : > { %v313_v29 = vadd.f32 %v312_v28, %v311_v27 }
 0x1db   : > { %v314_v30 = vrot.slane %v313_v29, 1 }
 0x1dd   : > { %v315_v31 = vadd.f32 %v314_v30, %v313_v29 }
 0x1df   : > { %578 = vpush %v315_v31 }
 0x210   : > { %s579_s30 = spop %578 }
 0x211   : > { %s317_s5 = smul.f32 0.001953125, %s579_s30 }
 0x213   : > { %s318_s7 = sadd.f32 0.001, %s317_s5 }
 0x215   : > { %v319_v36 = vstv %s318_s7 }
 0x216   : > { %684 = vrsqrt.f32 %v319_v36 }
 0x220   : > { %v685_v39 = vpop.eup %684 }
 0x221   : > { %580 = vpush %v685_v39 }
 0x222   : > { %582 = vpush %v352_v40 }
 0x252   : > { %s581_s10 = spop %580 }
 0x253   : > { %s325_s22 = smul.f32 %s581_s10, %s324_s20  ;;  %s1020_s6 = spop %582 }
 0x254   : > { %s327_s9 = smul.f32 %s581_s10, %s322_s12  ;;  %s377_s20 = sadd.s32 1, %s1011_s8 }
 0x255   : > { %s326_s30 = sadd.f32 %s325_s22, %s1016_s13  ;;  %s354_s5 = smul.f32 0.001953125, %s1020_s6 }
 0x256   : > { %s328_s7 = smul.f32 %s327_s9, %s299_s23  ;;  %s1037_s23 = scalar_lea.vmem [#allocation11], %s1115_s26 }
 0x257   : > { %v355_v41 = vstv %s354_s5  ;;  %v331_v42 = vstv %s326_s30  ;;  %s379_s22 = sld [smem:[#allocation8 + %s377_s20]]  ;;  %s397_s8 = scalar_lea.sflag [#allocation4], %s975_s25 }
 0x258   : > { %s329_s29 = ssub.f32 %s323_s14, %s328_s7  ;;  %v356_v43 = vsub.f32 %v993_v5, %v355_v41  ;;  %v357_v44 = vsub.f32 %v995_v6, %v355_v41  ;;  %v332_v47 = vmul.f32 %v331_v42, %v985_v0  ;;  %v333_v48 = vmul.f32 %v331_v42, %v987_v1  ;;  %s378_s14 = sld [smem:[#allocation7 + %s377_s20]] }
 0x25a   : > { %s330_s0 = smul.f32 %s1013_s11, %s329_s29  ;;  %v358_v45 = vmul.f32 %v356_v43, %v356_v43  ;;  %v359_v46 = vmul.f32 %v357_v44, %v357_v44 }
 0x25c   : > { %v334_v49 = vstv %s330_s0  ;;  %v360_v50 = vsel %vm286_vm0, %v358_v45, 0.0  ;;  %v361_v51 = vsel %vm286_vm0, %v359_v46, 0.0 }
 0x25d   : > { %v335_v52 = vadd.f32 %v334_v49, %v332_v47  ;;  %v336_v53 = vadd.f32 %v334_v49, %v333_v48  ;;  %v362_v54 = vadd.f32 %v361_v51, %v360_v50 }
 0x25e   : > { %s380_s10 = smul.f32 %s1013_s11, %s378_s14 }
 0x25f   : > { %337 = vst [vmem:[%s1037_s23] sm:$0x3] %v335_v52  ;;  %338 = vst [vmem:[%s1037_s23 + $0x4] sm:$0x3] %v336_v53  ;;  %363 = vadd.xlane.f32.xlu1 %v362_v54 }
 0x2ec   : > { %v364_v55 = vpop.xlane.xlu1 %363 }
 0x2ed   : > { %v365_v56 = vrot.slane %v364_v55, 4 }
 0x2ef   : > { %v366_v57 = vadd.f32 %v365_v56, %v364_v55 }
 0x2f1   : > { %v367_v58 = vrot.slane %v366_v57, 2 }
 0x2f3   : > { %v368_v59 = vadd.f32 %v367_v58, %v366_v57 }
 0x2f5   : > { %v369_v60 = vrot.slane %v368_v59, 1 }
 0x2f7   : > { %v370_v61 = vadd.f32 %v369_v60, %v368_v59 }
 0x2f9   : > { %584 = vpush %v370_v61 }
 0x32a   : > { %s585_s0 = spop %584 }
 0x32b   : > { %s372_s29 = smul.f32 0.001953125, %s585_s0 }
 0x32d   : > { %s373_s12 = sadd.f32 0.001, %s372_s29 }
 0x32f   : > { %v374_v62 = vstv %s373_s12 }
 0x330   : > { %686 = vrsqrt.f32 %v374_v62 }
 0x33a   : > { %v687_v63 = vpop.eup %686 }
 0x33b   : > { %586 = vpush %v687_v63 }
 0x36c   : > { %s587_s9 = spop %586 }
 0x36d   : > { %s381_s30 = smul.f32 %s587_s9, %s380_s10 }
 0x36e   : > { %s383_s7 = smul.f32 %s587_s9, %s378_s14 }
 0x36f   : > { %s382_s26 = sadd.f32 %s381_s30, %s1016_s13 }
 0x370   : > { %s384_s1 = smul.f32 %s383_s7, %s354_s5 }
 0x371   : > { %v387_v0 = vstv %s382_s26 }
 0x372   : > { %s385_s0 = ssub.f32 %s379_s22, %s384_s1  ;;  %v388_v1 = vmul.f32 %v993_v5, %v387_v0  ;;  %v389_v2 = vmul.f32 %v995_v6, %v387_v0 }
 0x374   : > { %s386_s29 = smul.f32 %s1013_s11, %s385_s0 }
 0x376   : > { %v390_v3 = vstv %s386_s29 }
 0x377   : > { %v391_v4 = vadd.f32 %v390_v3, %v388_v1  ;;  %v392_v7 = vadd.f32 %v390_v3, %v389_v2 }
 0x379   : > { %567 = vst [vmem:[%s1037_s23 + $0x2] sm:$0x3] %v391_v4  ;;  %568 = vst [vmem:[%s1037_s23 + $0x6] sm:$0x3] %v392_v7 }
 0x37a   : > { %s575_s1 = sshll.u32 %s843_s19, 6  ;;  %s426_s11 = sshll.u32 %s1037_s23, 4  ;;  %s427_s11 = int_to_ptr.vmem [resolvable:$true] %s426_s11 }
 0x37b   : > { %s409_s5 = scalar_lea.hbm %s1093_s4, %s575_s1  ;;  %s791_s12 = smov 64  }
 0x37c   : > { %p1116_p9 = scmp.ne.s32.totalorder %s1102_s27, 0  ;;  %s792_s25 = smov 128  }
 0x37d   : > { %s793_s20 = smov 2   ;;  %s794_s14 = smov 32  }
 0x37e   : > { %609 = sst [smem:[#allocation15]] (%p1116_p9), %s791_s12  ;;  %s795_s19 = smov [#allocation14]  }
 0x37f   : > { %610 = sst [smem:[#allocation15 + $0x1]] (%p1116_p9), %s792_s25  ;;  %s796_s23 = smov 0  }
 0x380   : > { %611 = sst [smem:[#allocation15 + $0x2]] (%p1116_p9), %s793_s20 }
 0x381   : > { %612 = sst [smem:[#allocation15 + $0x3]] (%p1116_p9), %s794_s14 }
 0x382   : > { %613 = sst [smem:[#allocation15 + $0x4]] (%p1116_p9), %s794_s14 }
 0x383   : > { %614 = sst [smem:[#allocation15 + $0x5]] (%p1116_p9), %s793_s20 }
 0x384   : > { %615 = dma.general (%p1116_p9), %s427_s11, 128, %s409_s5, %s397_s8, %s795_s19, [#allocation15], %s796_s23, 0  }
 0x385 PF: > { %s454_s10 = sand.u32 1, %s769_s15   ;;  %p1117_p10 = scmp.ne.s32.totalorder %s1103_s28, 0 }
 0x386   : > { %s455_s22 = scalar_lea.sflag [#allocation4], %s454_s10 }
 0x387   : > { %p628_p1 = pnand %p551_p6, %p1117_p10 }
 0x389   : > { %764 = dma.done.wait (!%p628_p1), %s455_s22, 128  }
 0x38a   : > { %766 = vsyncadd (!%p628_p1), %s455_s22, 4294967168  ;;  %p20_p2 = scmp.ge.s32.totalorder %s847_s21, 4   ;;  %s1118_s15 = smov %s773_s16 }
 0x38b   : > { %s1119_s16 = smov %s777_s17  ;;  %s1120_s17 = smov %s859_s24 }
 0x38c   : > { %s1121_s18 = smov %s847_s21  ;;  %22 = sbr.rel (!%p20_p2) target bundleno = 11 (0xb), region = 107 }
 0x393   :  { %460 = vsyncpa [#allocation3], 1 }
 0x394   :  { %462 = vsyncpa [#allocation3 + $0x1], 1 }
 0x395   :  { %463 = vsyncpa [#allocation4], 1 }
 0x396   :  { %465 = vsyncpa [#allocation4 + $0x1], 1 }
 0x397   :  { %466 = vsyncpa [#allocation5], 1 }
 0x398   :  { %468 = vsyncpa [#allocation5 + $0x1], 1 }
 0x399   :  { %469 = vsyncpa [#allocation6], 1 }
 0x39a   :  { %471 = vsyncpa [#allocation6 + $0x1], 1 }
 0x39b   :  { %472 = vsyncpa [#allocation9], 1 }

</bundles_post_ra>
